<compile_context>
chip_gen: v7x
topology: tpu7x:2x2x1
jax: 0.10.0
libtpu: 0.0.40
codegen_flags: <defaults>
</compile_context>

<pallas_src>
import jax
import jax.numpy as jnp
from jax.experimental import pallas as pl
from jax.experimental.pallas import tpu as pltpu

KERNEL = 5
STRIDE = 2


def conv_1d_shape(l_in, kernel_size, stride=1, padding=0, dilation=1):
    return (l_in + 2 * padding - dilation * (kernel_size - 1) - 1) // stride + 1


# ----------------------- fused Pallas kernel -----------------------

def _drgn_fused_kernel(x_ref, m1_ref, m2_ref, wh_ref, wd1_ref, wd2_ref,
                       bias_ref, eps_ref, out_ref):
    n1 = m1_ref.shape[1]          # conv1 flattened output dim (c1 * l1)
    n2 = m2_ref.shape[1]          # conv2 flattened output dim (c2 * l2)
    nh = wd1_ref.shape[1]         # decoder hidden width
    nw = out_ref.shape[1]         # output slab width (128 lanes)

    # packed bias block (single DMA): rows = [conv1, conv2, head, dec1, dec2]
    b1 = bias_ref[0:1, 0:n1]
    b2 = bias_ref[1:2, 0:n2]
    bh = bias_ref[2:3, :]
    bd1 = bias_ref[3:4, 0:nh]
    bd2 = bias_ref[4:5, 0:nw]

    # encoder: both Conv1d+ReLU layers as dense matmuls on the channel-major
    # flattened input (conv folded into m1/m2 at parameter-packing time).
    h1 = jnp.maximum(
        jnp.dot(x_ref[...], m1_ref[...], preferred_element_type=jnp.float32) + b1,
        0.0)
    h2 = jnp.maximum(
        jnp.dot(h1, m2_ref[...], preferred_element_type=jnp.float32) + b2,
        0.0)

    # head: one dot; first 128 lanes = [mean | log_var | zeros] (slab layout),
    # second 128 lanes = log_var duplicated in lanes 0..nl-1 (aligned with mean
    # so the sample below is purely elementwise — no cross-lane moves).
    head = jnp.dot(h2, wh_ref[...], preferred_element_type=jnp.float32) + bh
    ml = head[:, 0:nw]            # mean | log_var | zeros
    lv = head[:, nw:2 * nw]       # log_var aligned with mean lanes

    # reparameterized sample: j = eps * exp(log_var / 2) + mean (lanes 0..nl-1;
    # other lanes hold finite junk that the decoder weights / masks zero out).
    j = eps_ref[...] * jnp.exp(lv * 0.5) + ml

    # ptp = j[0,3] * rsqrt(j[0,0]^2 + j[0,1]^2 + j[0,2]^2)  via lane masks
    row0 = j[0:1, :]
    lane = jax.lax.broadcasted_iota(jnp.int32, row0.shape, 1)
    sumsq = jnp.sum(jnp.where(lane < 3, row0 * row0, 0.0), axis=1, keepdims=True)
    pos3 = jnp.sum(jnp.where(lane == 3, row0, 0.0), axis=1, keepdims=True)
    ptp = pos3 * jax.lax.rsqrt(sumsq)                      # (1, 1)

    # decoder MLP on j[:, 4:]: wd1 has zeros everywhere except rows 4..nl-1, so
    # the full 128-lane j can be fed straight to the MXU; wd2 places its output
    # directly at slab lanes [2*nl : 2*nl + l_in].
    hd = jnp.maximum(
        jnp.dot(j, wd1_ref[...], preferred_element_type=jnp.float32) + bd1, 0.0)
    dec = jnp.dot(hd, wd2_ref[...], preferred_element_type=jnp.float32) + bd2

    # single lane-dense output slab: [mean | log_var | dec*ptp | zero pad]
    out_ref[...] = ml + dec * ptp


# ----------------------- parameter packing (host, once) -----------------------

def conv1d_to_dense(w_conv, l_in, stride):
    """Fold a Conv1d weight (PyTorch layout (C_out, C_in, K)) into the dense
    matrix mapping channel-major flattened inputs (C_in*l_in,) to channel-major
    flattened outputs (C_out*l_out,). Exact same linear map as the conv."""
    c_out, c_in, k = w_conv.shape
    l_out = conv_1d_shape(l_in, k, stride=stride)
    i_idx = jnp.arange(l_in)[:, None]                     # input position
    t_idx = jnp.arange(l_out)[None, :]                    # output position
    tap = i_idx - stride * t_idx                          # (l_in, l_out)
    valid = (tap >= 0) & (tap < k)
    tap_c = jnp.clip(tap, 0, k - 1)
    w_cio = jnp.transpose(w_conv, (1, 0, 2))              # (c_in, c_out, k)
    g = w_cio[:, :, tap_c]                                # (c_in, c_out, l_in, l_out)
    g = jnp.where(valid[None, None, :, :], g, 0.0)
    return jnp.transpose(g, (0, 2, 1, 3)).reshape(c_in * l_in, c_out * l_out)


def pack_params(raw, c_in, l_in, slab_width=128):
    c1 = raw["w_conv1"].shape[0]
    c2 = raw["w_conv2"].shape[0]
    l1 = conv_1d_shape(l_in, KERNEL, stride=STRIDE)
    l2 = conv_1d_shape(l1, KERNEL, stride=STRIDE)
    nl = raw["w_mean"].shape[1]
    nh = raw["w_d1"].shape[1]
    nd = raw["w_d2"].shape[1]
    flat = c2 * l2
    assert 2 * nl + nd <= slab_width
    assert max(c1 * l1, flat) <= 2 * slab_width

    m1 = conv1d_to_dense(raw["w_conv1"], l_in, STRIDE)    # (c_in*l_in, c1*l1)
    m2 = conv1d_to_dense(raw["w_conv2"], l1, STRIDE)      # (c1*l1,  c2*l2)

    # head weight: cols [0:nl]=w_mean, [nl:2nl]=w_lv (slab layout), and a
    # duplicate of w_lv at cols [slab:slab+nl] (lane-aligned with mean).
    w_head = jnp.zeros((flat, 2 * slab_width), jnp.float32)
    w_head = w_head.at[:, 0:nl].set(raw["w_mean"])
    w_head = w_head.at[:, nl:2 * nl].set(raw["w_lv"])
    w_head = w_head.at[:, slab_width:slab_width + nl].set(raw["w_lv"])
    b_head = jnp.zeros((2 * slab_width,), jnp.float32)
    b_head = b_head.at[0:nl].set(raw["b_mean"]).at[nl:2 * nl].set(raw["b_lv"])
    b_head = b_head.at[slab_width:slab_width + nl].set(raw["b_lv"])

    # decoder layer 1: acts on j[:, 4:]; only rows 4..nl-1 are non-zero.
    wd1 = jnp.zeros((slab_width, nh), jnp.float32)
    wd1 = wd1.at[4:nl, :].set(raw["w_d1"])

    # decoder layer 2: output placed at slab lanes [2*nl : 2*nl + nd].
    wd2 = jnp.zeros((nh, slab_width), jnp.float32)
    wd2 = wd2.at[:, 2 * nl:2 * nl + nd].set(raw["w_d2"])
    b_d2 = jnp.zeros((slab_width,), jnp.float32)
    b_d2 = b_d2.at[2 * nl:2 * nl + nd].set(raw["b_d2"])

    # all five biases packed into one (5, 2*slab) block -> single input DMA.
    def row(v):
        return jnp.pad(v, (0, 2 * slab_width - v.shape[0]))
    b1_t = jnp.repeat(raw["b_conv1"], l1)                 # channel-major tiling
    b2_t = jnp.repeat(raw["b_conv2"], l2)
    bias = jnp.stack(
        [row(b1_t), row(b2_t), row(b_head), row(raw["b_d1"]), row(b_d2)], axis=0)

    return {"m1": m1, "m2": m2, "w_head": w_head, "wd1": wd1, "wd2": wd2,
            "bias": bias}


# ----------------------- wrapper -----------------------

def drgn_forward(packed, w, eps):
    b, c_in, l_in = w.shape
    nl = eps.shape[1]
    nw = packed["wd2"].shape[1]                           # output slab width

    x_flat = w.reshape(b, c_in * l_in)                    # channel-major flatten
    eps_wide = jnp.pad(eps, ((0, 0), (0, nw - nl)))       # zero-pad to slab width

    vmem = pl.BlockSpec(memory_space=pltpu.MemorySpace.VMEM)
    slab = pl.pallas_call(
        _drgn_fused_kernel,
        out_shape=jax.ShapeDtypeStruct((b, nw), jnp.float32),
        in_specs=[vmem] * 8,
        out_specs=vmem,
    )(x_flat, packed["m1"], packed["m2"], packed["w_head"], packed["wd1"],
      packed["wd2"], packed["bias"], eps_wide)

    mean = slab[:, 0:nl]
    log_var = slab[:, nl:2 * nl]
    dec = slab[:, 2 * nl:2 * nl + l_in]
    return mean, log_var, dec


# ----------------------- main -----------------------

if __name__ == "__main__":
    B, C_IN, L_IN = 2, 4, 32
    C1, C2 = 8, 16                       # out_channels_1, out_channels_2
    N_LATENTS = 8
    DEC_HIDDEN = 16

    l1 = conv_1d_shape(L_IN, KERNEL, stride=STRIDE)       # 14
    l2 = conv_1d_shape(l1, KERNEL, stride=STRIDE)         # 5
    flattened = C2 * l2                                   # 80

    key = jax.random.PRNGKey(0)
    ks = jax.random.split(key, 12)

    def init(k, shape, scale=0.1):
        return scale * jax.random.normal(k, shape, dtype=jnp.float32)

    raw = {
        # PyTorch Conv1d weight layout: (C_out, C_in, K)
        "w_conv1": init(ks[0], (C1, C_IN, KERNEL)),
        "b_conv1": init(ks[1], (C1,)),
        "w_conv2": init(ks[2], (C2, C1, KERNEL)),
        "b_conv2": init(ks[3], (C2,)),
        # Linear weights stored (in_features, out_features)
        "w_mean": init(ks[4], (flattened, N_LATENTS)),
        "b_mean": init(ks[5], (N_LATENTS,)),
        "w_lv": init(ks[7], (flattened, N_LATENTS)),
        "b_lv": init(ks[8], (N_LATENTS,)),
        # decoder MLP: Linear(n_latents-4, hidden) -> ReLU -> Linear(hidden, l_in)
        "w_d1": init(ks[6], (N_LATENTS - 4, DEC_HIDDEN)),
        "b_d1": init(ks[9], (DEC_HIDDEN,)),
        "w_d2": init(ks[10], (DEC_HIDDEN, L_IN)),
        "b_d2": jnp.zeros((L_IN,), jnp.float32),
    }
    packed = pack_params(raw, C_IN, L_IN)

    w_in = jax.random.normal(ks[11], (B, C_IN, L_IN), dtype=jnp.float32)
    # TODO(synk): torch.randn_like happens inside sample(); here eps is drawn on
    # the host with an explicit key and passed in (same distribution).
    eps = jax.random.normal(jax.random.PRNGKey(1), (B, N_LATENTS), dtype=jnp.float32)

    fwd = jax.jit(drgn_forward)
    mean, log_var, dec = fwd(packed, w_in, eps)
    jax.block_until_ready((mean, log_var, dec))

    assert mean.shape == (B, N_LATENTS)
    assert log_var.shape == (B, N_LATENTS)
    assert dec.shape == (B, L_IN)
    print("KERNEL_OK")
</pallas_src>

<mosaic_0001>
module attributes {stable_mosaic.version = 11 : i64} {
  func.func @_drgn_fused_kernel(%arg0: memref<2x128xf32, #tpu.memory_space<vmem>>, %arg1: memref<128x112xf32, #tpu.memory_space<vmem>>, %arg2: memref<112x80xf32, #tpu.memory_space<vmem>>, %arg3: memref<80x256xf32, #tpu.memory_space<vmem>>, %arg4: memref<128x16xf32, #tpu.memory_space<vmem>>, %arg5: memref<16x128xf32, #tpu.memory_space<vmem>>, %arg6: memref<5x256xf32, #tpu.memory_space<vmem>>, %arg7: memref<2x128xf32, #tpu.memory_space<vmem>>, %arg8: memref<2x128xf32, #tpu.memory_space<vmem>>) attributes {dimension_semantics = [], scalar_prefetch = 0 : i64, scratch_operands = 0 : i64, tpu.core_type = #tpu.core_type<tc>} {
    %c0 = arith.constant 0 : index
    %c0_0 = arith.constant 0 : index
    %0 = vector.load %arg6[%c0, %c0_0] : memref<5x256xf32, #tpu.memory_space<vmem>>, vector<1x112xf32>
    %c1 = arith.constant 1 : index
    %c0_1 = arith.constant 0 : index
    %1 = vector.load %arg6[%c1, %c0_1] : memref<5x256xf32, #tpu.memory_space<vmem>>, vector<1x80xf32>
    %c2 = arith.constant 2 : index
    %c0_2 = arith.constant 0 : index
    %2 = vector.load %arg6[%c2, %c0_2] : memref<5x256xf32, #tpu.memory_space<vmem>>, vector<1x256xf32>
    %c3 = arith.constant 3 : index
    %c0_3 = arith.constant 0 : index
    %3 = vector.load %arg6[%c3, %c0_3] : memref<5x256xf32, #tpu.memory_space<vmem>>, vector<1x16xf32>
    %c4 = arith.constant 4 : index
    %c0_4 = arith.constant 0 : index
    %4 = vector.load %arg6[%c4, %c0_4] : memref<5x256xf32, #tpu.memory_space<vmem>>, vector<1x128xf32>
    %c0_5 = arith.constant 0 : index
    %c0_6 = arith.constant 0 : index
    %5 = vector.load %arg0[%c0_5, %c0_6] : memref<2x128xf32, #tpu.memory_space<vmem>>, vector<2x128xf32>
    %c0_7 = arith.constant 0 : index
    %c0_8 = arith.constant 0 : index
    %6 = vector.load %arg1[%c0_7, %c0_8] : memref<128x112xf32, #tpu.memory_space<vmem>>, vector<128x112xf32>
    %cst = arith.constant dense<0.000000e+00> : vector<2x112xf32>
    %7 = tpu.matmul %5, %6, %cst {dimension_numbers = #tpu.dot_dimension_numbers<[1], [0], [0], [1], [0, 0, 1, 1], [], []>} : vector<2x128xf32>, vector<128x112xf32>, vector<2x112xf32> -> vector<2x112xf32>
    %8 = vector.broadcast %0 : vector<1x112xf32> to vector<2x112xf32>
    %9 = arith.addf %7, %8 : vector<2x112xf32>
    %cst_9 = arith.constant 0.000000e+00 : f32
    %10 = vector.broadcast %cst_9 : f32 to vector<2x112xf32>
    %11 = arith.maximumf %9, %10 : vector<2x112xf32>
    %c0_10 = arith.constant 0 : index
    %c0_11 = arith.constant 0 : index
    %12 = vector.load %arg2[%c0_10, %c0_11] : memref<112x80xf32, #tpu.memory_space<vmem>>, vector<112x80xf32>
    %cst_12 = arith.constant dense<0.000000e+00> : vector<2x80xf32>
    %13 = tpu.matmul %11, %12, %cst_12 {dimension_numbers = #tpu.dot_dimension_numbers<[1], [0], [0], [1], [0, 0, 1, 1], [], []>} : vector<2x112xf32>, vector<112x80xf32>, vector<2x80xf32> -> vector<2x80xf32>
    %14 = vector.broadcast %1 : vector<1x80xf32> to vector<2x80xf32>
    %15 = arith.addf %13, %14 : vector<2x80xf32>
    %cst_13 = arith.constant 0.000000e+00 : f32
    %16 = vector.broadcast %cst_13 : f32 to vector<2x80xf32>
    %17 = arith.maximumf %15, %16 : vector<2x80xf32>
    %c0_14 = arith.constant 0 : index
    %c0_15 = arith.constant 0 : index
    %18 = vector.load %arg3[%c0_14, %c0_15] : memref<80x256xf32, #tpu.memory_space<vmem>>, vector<80x256xf32>
    %cst_16 = arith.constant dense<0.000000e+00> : vector<2x256xf32>
    %19 = tpu.matmul %17, %18, %cst_16 {dimension_numbers = #tpu.dot_dimension_numbers<[1], [0], [0], [1], [0, 0, 1, 1], [], []>} : vector<2x80xf32>, vector<80x256xf32>, vector<2x256xf32> -> vector<2x256xf32>
    %20 = vector.broadcast %2 : vector<1x256xf32> to vector<2x256xf32>
    %21 = arith.addf %19, %20 : vector<2x256xf32>
    %22 = vector.extract_strided_slice %21 {offsets = [0, 0], sizes = [2, 128], strides = [1, 1]} : vector<2x256xf32> to vector<2x128xf32>
    %23 = vector.extract_strided_slice %21 {offsets = [0, 128], sizes = [2, 128], strides = [1, 1]} : vector<2x256xf32> to vector<2x128xf32>
    %c0_17 = arith.constant 0 : index
    %c0_18 = arith.constant 0 : index
    %24 = vector.load %arg7[%c0_17, %c0_18] : memref<2x128xf32, #tpu.memory_space<vmem>>, vector<2x128xf32>
    %cst_19 = arith.constant 5.000000e-01 : f32
    %25 = vector.broadcast %cst_19 : f32 to vector<2x128xf32>
    %26 = arith.mulf %23, %25 : vector<2x128xf32>
    %27 = math.exp %26 : vector<2x128xf32>
    %28 = arith.mulf %24, %27 : vector<2x128xf32>
    %29 = arith.addf %28, %22 : vector<2x128xf32>
    %30 = vector.extract_strided_slice %29 {offsets = [0, 0], sizes = [1, 128], strides = [1, 1]} : vector<2x128xf32> to vector<1x128xf32>
    %31 = tpu.iota {dimensions = array<i32: 1>} : vector<1x128xi32>
    %c3_i32 = arith.constant 3 : i32
    %32 = vector.broadcast %c3_i32 : i32 to vector<1x128xi32>
    %33 = arith.cmpi slt, %31, %32 : vector<1x128xi32>
    %34 = arith.mulf %30, %30 : vector<1x128xf32>
    %cst_20 = arith.constant 0.000000e+00 : f32
    %35 = vector.broadcast %cst_20 : f32 to vector<1x128xf32>
    %36 = arith.select %33, %34, %35 : vector<1x128xi1>, vector<1x128xf32>
    %cst_21 = arith.constant dense<0.000000e+00> : vector<1xf32>
    %37 = vector.multi_reduction <add>, %36, %cst_21 [1] : vector<1x128xf32> to vector<1xf32>
    %38 = vector.shape_cast %37 : vector<1xf32> to vector<1x1xf32>
    %c3_i32_22 = arith.constant 3 : i32
    %39 = vector.broadcast %c3_i32_22 : i32 to vector<1x128xi32>
    %40 = arith.cmpi eq, %31, %39 : vector<1x128xi32>
    %cst_23 = arith.constant 0.000000e+00 : f32
    %41 = vector.broadcast %cst_23 : f32 to vector<1x128xf32>
    %42 = arith.select %40, %30, %41 : vector<1x128xi1>, vector<1x128xf32>
    %cst_24 = arith.constant dense<0.000000e+00> : vector<1xf32>
    %43 = vector.multi_reduction <add>, %42, %cst_24 [1] : vector<1x128xf32> to vector<1xf32>
    %44 = vector.shape_cast %43 : vector<1xf32> to vector<1x1xf32>
    %45 = math.rsqrt %38 : vector<1x1xf32>
    %46 = arith.mulf %44, %45 : vector<1x1xf32>
    %c0_25 = arith.constant 0 : index
    %c0_26 = arith.constant 0 : index
    %47 = vector.load %arg4[%c0_25, %c0_26] : memref<128x16xf32, #tpu.memory_space<vmem>>, vector<128x16xf32>
    %cst_27 = arith.constant dense<0.000000e+00> : vector<2x16xf32>
    %48 = tpu.matmul %29, %47, %cst_27 {dimension_numbers = #tpu.dot_dimension_numbers<[1], [0], [0], [1], [0, 0, 1, 1], [], []>} : vector<2x128xf32>, vector<128x16xf32>, vector<2x16xf32> -> vector<2x16xf32>
    %49 = vector.broadcast %3 : vector<1x16xf32> to vector<2x16xf32>
    %50 = arith.addf %48, %49 : vector<2x16xf32>
    %cst_28 = arith.constant 0.000000e+00 : f32
    %51 = vector.broadcast %cst_28 : f32 to vector<2x16xf32>
    %52 = arith.maximumf %50, %51 : vector<2x16xf32>
    %c0_29 = arith.constant 0 : index
    %c0_30 = arith.constant 0 : index
    %53 = vector.load %arg5[%c0_29, %c0_30] : memref<16x128xf32, #tpu.memory_space<vmem>>, vector<16x128xf32>
    %cst_31 = arith.constant dense<0.000000e+00> : vector<2x128xf32>
    %54 = tpu.matmul %52, %53, %cst_31 {dimension_numbers = #tpu.dot_dimension_numbers<[1], [0], [0], [1], [0, 0, 1, 1], [], []>} : vector<2x16xf32>, vector<16x128xf32>, vector<2x128xf32> -> vector<2x128xf32>
    %55 = vector.broadcast %4 : vector<1x128xf32> to vector<2x128xf32>
    %56 = arith.addf %54, %55 : vector<2x128xf32>
    %57 = vector.broadcast %46 : vector<1x1xf32> to vector<2x128xf32>
    %58 = arith.mulf %56, %57 : vector<2x128xf32>
    %59 = arith.addf %22, %58 : vector<2x128xf32>
    %c0_32 = arith.constant 0 : index
    %c0_33 = arith.constant 0 : index
    %60 = vector.load %arg8[%c0_32, %c0_33] : memref<2x128xf32, #tpu.memory_space<vmem>>, vector<2x128xf32>
    tpu.vector_store %arg8[%c0_32, %c0_33], %59 {strides = array<i32>} : memref<2x128xf32, #tpu.memory_space<vmem>>, vector<2x128xf32>,
    return
  }
}

</mosaic_0001>

<bundles_post_ra>
// kernel: drgn_forward.1
= control target key start
LH: loop header
LB: loop body
LE: loop exit
PB: predicated region body
PF: predicated region fallthrough
CT: control target
= control target key end

     0   :  { %v777_v0 = vmov 0.0|0.0   ;;  %vm778_vm0 = vmmov 0   ;;  %v779_v4 = vmov 0.0   ;;  %vm137_vm1 = vcmask 916480   ;;  %s1086_s1 = inlined_call_operand.vmem [shape: f32[128,112], index: 1, kind: input, shape index: {}]   ;;  %s1087_s2 = inlined_call_operand.vmem [shape: f32[112,80], index: 2, kind: input, shape index: {}]   ;;  %s1088_s0 = inlined_call_operand.vmem [shape: f32[2,128], index: 0, kind: input, shape index: {}]   ;;  %s1089_s3 = inlined_call_operand.vmem [shape: f32[80,256], index: 3, kind: input, shape index: {}]   ;;  %s1090_s6 = inlined_call_operand.vmem [shape: f32[5,256], index: 6, kind: input, shape index: {}]   ;;  %s1091_s4 = inlined_call_operand.vmem [shape: f32[128,16], index: 4, kind: input, shape index: {}]   ;;  %s1092_s7 = inlined_call_operand.vmem [shape: f32[2,128], index: 7, kind: input, shape index: {}]   ;;  %s1093_s5 = inlined_call_operand.vmem [shape: f32[16,128], index: 5, kind: input, shape index: {}]   ;;  %s1094_s8 = inlined_call_operand.vmem [shape: f32[2,128], index: 8, kind: output, shape index: {}]  }
   0x1   :  { %678 = vmatprep.subr.bf16.mxu0 %v777_v0  ;;  %v36_v1 = vld [vmem:[%s1086_s1] sm:$0xff]  ;;  %v37_v2 = vld [vmem:[%s1086_s1 + $0x8] sm:$0xff]  ;;  %v38_v3 = vld [vmem:[%s1086_s1 + $0x10] sm:$0xff]  ;;  %602 = vmatprep.mubr.msk.f32.mxu0 %vm778_vm0, %v779_v4  ;;  %vm243_vm2 = vcmask 654336   ;;  %vm329_vm5 = vcmask 1040384   ;;  %vm429_vm6 = vcmask 130048  }
   0x2   :  { %v679_v5 = vpack.c.bf16 %v37_v2, %v36_v1  ;;  %v39_v6 = vld [vmem:[%s1086_s1 + $0x18] sm:$0xff]  ;;  %702 = vmatprep.subr.bf16.mxu1 %v777_v0  ;;  %633 = vmatprep.mubr.msk.f32.mxu1 %vm778_vm0, %v779_v4  ;;  %v40_v8 = vld [vmem:[%s1086_s1 + $0x20] sm:$0xff]  ;;  %v41_v9 = vld [vmem:[%s1086_s1 + $0x28] sm:$0xff] }
   0x3   :  { %v682_v7 = vpack.c.bf16 %v39_v6, %v38_v3  ;;  %v123_v10 = vld [vmem:[%s1087_s2] sm:$0xff]  ;;  %v124_v11 = vld [vmem:[%s1087_s2 + $0x8] sm:$0xff]  ;;  %v125_v12 = vld [vmem:[%s1087_s2 + $0x10] sm:$0xff]  ;;  %v685_v14 = vpack.c.bf16 %v41_v9, %v40_v8 }
   0x4   :  { %680 = vmatpush3.bf16.msra.mxu0 %v679_v5  ;;  %v126_v13 = vld [vmem:[%s1087_s2 + $0x18] sm:$0xff]  ;;  %v703_v15 = vpack.c.bf16 %v124_v11, %v123_v10  ;;  %v42_v16 = vld [vmem:[%s1086_s1 + $0x30] sm:$0xff]  ;;  %v127_v19 = vld [vmem:[%s1087_s2 + $0x20] sm:$0xff] }
   0x5   :  { %681 = vmatprep.subr.bf16.mxu0 %v777_v0  ;;  %v43_v17 = vld [vmem:[%s1086_s1 + $0x38] sm:$0xff]  ;;  %v706_v18 = vpack.c.bf16 %v126_v13, %v125_v12  ;;  %v128_v20 = vld [vmem:[%s1087_s2 + $0x28] sm:$0xff]  ;;  %v44_v22 = vld [vmem:[%s1086_s1 + $0x40] sm:$0xff] }
   0x6   :  { %704 = vmatpush3.bf16.msra.mxu1 %v703_v15  ;;  %v688_v21 = vpack.c.bf16 %v43_v17, %v42_v16  ;;  %v45_v23 = vld [vmem:[%s1086_s1 + $0x48] sm:$0xff]  ;;  %v709_v24 = vpack.c.bf16 %v128_v20, %v127_v19  ;;  %v129_v25 = vld [vmem:[%s1087_s2 + $0x30] sm:$0xff]  ;;  %v130_v26 = vld [vmem:[%s1087_s2 + $0x38] sm:$0xff] }
   0x7   :  { %705 = vmatprep.subr.bf16.mxu1 %v777_v0  ;;  %v691_v27 = vpack.c.bf16 %v45_v23, %v44_v22  ;;  %v46_v28 = vld [vmem:[%s1086_s1 + $0x50] sm:$0xff]  ;;  %v47_v29 = vld [vmem:[%s1086_s1 + $0x58] sm:$0xff]  ;;  %v712_v30 = vpack.c.bf16 %v130_v26, %v129_v25  ;;  %v131_v31 = vld [vmem:[%s1087_s2 + $0x40] sm:$0xff] }
   0x8   :  { %683 = vmatpush3.bf16.msra.mxu0 %v682_v7  ;;  %v132_v32 = vld [vmem:[%s1087_s2 + $0x48] sm:$0xff]  ;;  %v694_v33 = vpack.c.bf16 %v47_v29, %v46_v28  ;;  %v48_v34 = vld [vmem:[%s1086_s1 + $0x60] sm:$0xff]  ;;  %v133_v37 = vld [vmem:[%s1087_s2 + $0x50] sm:$0xff] }
   0x9   :  { %684 = vmatprep.subr.bf16.mxu0 %v777_v0  ;;  %v49_v35 = vld [vmem:[%s1086_s1 + $0x68] sm:$0xff]  ;;  %v715_v36 = vpack.c.bf16 %v132_v32, %v131_v31  ;;  %v134_v38 = vld [vmem:[%s1087_s2 + $0x58] sm:$0xff]  ;;  %v50_v40 = vld [vmem:[%s1086_s1 + $0x70] sm:$0xff] }
   0xa   :  { %707 = vmatpush3.bf16.msra.mxu1 %v706_v18  ;;  %v697_v39 = vpack.c.bf16 %v49_v35, %v48_v34  ;;  %v51_v41 = vld [vmem:[%s1086_s1 + $0x78] sm:$0xff]  ;;  %v718_v42 = vpack.c.bf16 %v134_v38, %v133_v37  ;;  %v35_v44 = vld [vmem:[%s1088_s0] sm:$0x3]  ;;  %v136_v46 = vld [vmem:[%s1087_s2 + $0x68] sm:$0xff] }
   0xb   :  { %708 = vmatprep.subr.bf16.mxu1 %v777_v0  ;;  %v700_v43 = vpack.c.bf16 %v51_v41, %v50_v40  ;;  %v135_v45 = vld [vmem:[%s1087_s2 + $0x60] sm:$0xff]  ;;  %v213_v48 = vld [vmem:[%s1089_s3 + $0x8] sm:$0xff]  ;;  %v215_v49 = vld [vmem:[%s1089_s3 + $0x18] sm:$0xff] }
   0xc   :  { %686 = vmatpush3.bf16.msra.mxu0 %v685_v14  ;;  %v721_v47 = vpack.c.bf16 %v136_v46, %v135_v45  ;;  %v723_v50 = vpack.c.bf16 %v215_v49, %v213_v48  ;;  %v29_v51 = vld [vmem:[%s1090_s6] ss:$0 sm:$0xff]  ;;  %v214_v53 = vld [vmem:[%s1089_s3 + $0x10] sm:$0xff]  ;;  %v217_v55 = vld [vmem:[%s1089_s3 + $0x28] sm:$0xff]  ;;  %v233_v49 = vlaneseq }
   0xd   :  { %687 = vmatprep.subr.bf16.mxu0 %v777_v0  ;;  %v212_v52 = vld [vmem:[%s1089_s3] sm:$0xff]  ;;  %v219_v56 = vld [vmem:[%s1089_s3 + $0x38] sm:$0xff]  ;;  %v218_v63 = vld [vmem:[%s1089_s3 + $0x30] sm:$0xff] }
   0xe   :  { %710 = vmatpush3.bf16.msra.mxu1 %v709_v24  ;;  %v725_v59 = vpack.c.bf16 %v214_v53, %v212_v52  ;;  %v727_v61 = vpack.c.bf16 %v219_v56, %v217_v55  ;;  %v216_v62 = vld [vmem:[%s1089_s3 + $0x20] sm:$0xff]  ;;  %v221_v1 = vld [vmem:[%s1089_s3 + $0x48] sm:$0xff]  ;;  %v223_v2 = vld [vmem:[%s1089_s3 + $0x58] sm:$0xff] }
   0xf   :  { %711 = vmatprep.subr.bf16.mxu1 %v777_v0  ;;  %v729_v3 = vpack.c.bf16 %v218_v63, %v216_v62  ;;  %v731_v5 = vpack.c.bf16 %v223_v2, %v221_v1  ;;  %v220_v6 = vld [vmem:[%s1089_s3 + $0x40] sm:$0xff]  ;;  %v222_v7 = vld [vmem:[%s1089_s3 + $0x50] sm:$0xff]  ;;  %v225_v8 = vld [vmem:[%s1089_s3 + $0x68] sm:$0xff]  ;;  %v325_v1 = vand.u32 127, %v233_v49 }
  0x10   :  { %689 = vmatpush3.bf16.msra.mxu0 %v688_v21  ;;  %v227_v9 = vld [vmem:[%s1089_s3 + $0x78] sm:$0xff]  ;;  %v733_v10 = vpack.c.bf16 %v222_v7, %v220_v6  ;;  %v224_v12 = vld [vmem:[%s1089_s3 + $0x60] sm:$0xff]  ;;  %v226_v13 = vld [vmem:[%s1089_s3 + $0x70] sm:$0xff] }
  0x11   :  { %690 = vmatprep.subr.bf16.mxu0 %v777_v0  ;;  %v735_v11 = vpack.c.bf16 %v227_v9, %v225_v8  ;;  %v737_v14 = vpack.c.bf16 %v226_v13, %v224_v12  ;;  %v229_v15 = vld [vmem:[%s1089_s3 + $0x88] sm:$0xff]  ;;  %v231_v16 = vld [vmem:[%s1089_s3 + $0x98] sm:$0xff]  ;;  %v228_v18 = vld [vmem:[%s1089_s3 + $0x80] sm:$0xff]  ;;  %vm326_vm3 = vcmp.lt.s32.totalorder %v325_v1, 3  ;;  %vm333_vm4 = vcmp.eq.s32.totalorder %v325_v1, 3 }
  0x12   :  { %713 = vmatpush3.bf16.msra.mxu1 %v712_v30  ;;  %v739_v17 = vpack.c.bf16 %v231_v16, %v229_v15  ;;  %v230_v19 = vld [vmem:[%s1089_s3 + $0x90] sm:$0xff]  ;;  %v340_v21 = vld [vmem:[%s1091_s4] sm:$0xff]  ;;  %v341_v22 = vld [vmem:[%s1091_s4 + $0x8] sm:$0xff] }
  0x13   :  { %714 = vmatprep.subr.bf16.mxu1 %v777_v0  ;;  %v741_v20 = vpack.c.bf16 %v230_v19, %v228_v18  ;;  %v342_v23 = vld [vmem:[%s1091_s4 + $0x10] sm:$0xff]  ;;  %v744_v24 = vpack.c.bf16 %v341_v22, %v340_v21  ;;  %v343_v25 = vld [vmem:[%s1091_s4 + $0x18] sm:$0xff]  ;;  %v344_v32 = vld [vmem:[%s1091_s4 + $0x20] sm:$0xff] }
  0x14   :  { %692 = vmatpush3.bf16.msra.mxu0 %v691_v27  ;;  %v747_v26 = vpack.c.bf16 %v343_v25, %v342_v23  ;;  %v30_v27 = vld [vmem:[%s1090_s6 + $0x1] ss:$0 sm:$0xff]  ;;  %v346_v35 = vld [vmem:[%s1091_s4 + $0x30] sm:$0xff]  ;;  %v349_v38 = vld [vmem:[%s1091_s4 + $0x48] sm:$0xff] }
  0x15   :  { %693 = vmatprep.subr.bf16.mxu0 %v777_v0  ;;  %v348_v37 = vld [vmem:[%s1091_s4 + $0x40] sm:$0xff]  ;;  %v350_v40 = vld [vmem:[%s1091_s4 + $0x50] sm:$0xff]  ;;  %v351_v41 = vld [vmem:[%s1091_s4 + $0x58] sm:$0xff] }
  0x16   :  { %716 = vmatpush3.bf16.msra.mxu1 %v715_v36  ;;  %v354_v46 = vld [vmem:[%s1091_s4 + $0x70] sm:$0xff]  ;;  %v514_v52 = vld [vmem:[%s1090_s6 + $0x2] ss:$8 sm:$0x3]  ;;  %v33_v12 = vld [vmem:[%s1090_s6 + $0x3] ss:$0 sm:$0xff] }
  0x17   :  { %717 = vmatprep.subr.bf16.mxu1 %v777_v0  ;;  %v427_v9 = vld [vmem:[%s1093_s5] sm:$0xff] }
  0x18   :  { %695 = vmatpush3.bf16.msra.mxu0 %v694_v33  ;;  %v345_v33 = vld [vmem:[%s1091_s4 + $0x28] sm:$0xff]  ;;  %v34_v21 = vld [vmem:[%s1090_s6 + $0x4] ss:$0 sm:$0xff] }
  0x19   :  { %696 = vmatprep.subr.bf16.mxu0 %v777_v0  ;;  %v750_v34 = vpack.c.bf16 %v345_v33, %v344_v32 }
  0x1a   :  { %719 = vmatpush3.bf16.msra.mxu1 %v718_v42  ;;  %v759_v42 = vpack.c.bf16 %v351_v41, %v350_v40 }
  0x1b   :  { %720 = vmatprep.subr.bf16.mxu1 %v777_v0 }
  0x1c   :  { %698 = vmatpush3.bf16.msra.mxu0 %v697_v39  ;;  %v756_v39 = vpack.c.bf16 %v349_v38, %v348_v37 }
  0x1d   :  { %699 = vmatprep.subr.bf16.mxu0 %v777_v0 }
  0x1e   :  { %722 = vmatpush3.bf16.msra.mxu1 %v721_v47  ;;  %v355_v47 = vld [vmem:[%s1091_s4 + $0x78] sm:$0xff] }
  0x1f   :  { %724 = vmatprep.subr.bf16.mxu1 %v723_v50  ;;  %v765_v48 = vpack.c.bf16 %v355_v47, %v354_v46  ;;  %v234_v50 = vshrl.u32 %v233_v49, 7 }
  0x20   :  { %701 = vmatpush3.bf16.msra.mxu0 %v700_v43  ;;  %v352_v43 = vld [vmem:[%s1091_s4 + $0x60] sm:$0xff] }
  0x21   :  { %743 = vmatprep.subr.bf16.mxu0 %v777_v0 }
  0x23   :  { %603 = vmatmul.mubr.f32.vlgmr.msra.gmra.mrb[0].mxu0 %v35_v44  ;;  %v353_v44 = vld [vmem:[%s1091_s4 + $0x68] sm:$0xff] }
  0x24   :  { %668 = vmatprep.mubr.msk.f32.mxu0 %vm778_vm0, %v779_v4  ;;  %745 = vmatpush3.bf16.msra.mxu0 %v744_v24  ;;  %v762_v45 = vpack.c.bf16 %v353_v44, %v352_v43 }
  0x25   :  { %746 = vmatprep.subr.bf16.mxu0 %v777_v0 }
  0x28   :  { %748 = vmatpush3.bf16.msra.mxu0 %v747_v26 }
  0x29   :  { %749 = vmatprep.subr.bf16.mxu0 %v777_v0 }
  0x2c   :  { %751 = vmatpush3.bf16.msra.mxu0 %v750_v34 }
  0x2d   :  { %752 = vmatprep.subr.bf16.mxu0 %v777_v0 }
  0xf6   :  { %v118_v54 = vpop.f32.mrb[0].mxu0 }
  0xf7   :  { %v119_v57 = vadd.f32 %v118_v54, %v29_v51  ;;  %v604_v58 = vpop.f32.mrb[1].mxu0  ;;  %v239_v51 = vsub.s32 1, %v234_v50 }
  0xf9   :  { %v122_v60 = vmax.f32 %v119_v57, 0.0  ;;  %v240_v53 = vrot.slane %v514_v52, %v239_v51 }
  0xfb   :  { %634 = vmatmul.mubr.msk.f32.vlgmr.msra.gmra.mrb[0].mxu1 %vm137_vm1, %v122_v60 }
  0xfc   :  { %726 = vmatpush1.bf16.msra.mxu1 %v725_v59  ;;  %311 = vmatprep.mubr.f32.mxu1 %v779_v4  ;;  %v235_v59 = vsub.s32 0, %v234_v50 }
  0xfd   :  { %728 = vmatprep.subr.bf16.mxu1 %v727_v61 }
  0xfe   :  { %v236_v60 = vrot.slane %v514_v52, %v235_v59 }
 0x100   :  { %730 = vmatpush1.bf16.msra.mxu1 %v729_v3 }
 0x101   :  { %732 = vmatprep.subr.bf16.mxu1 %v731_v5 }
 0x104   :  { %734 = vmatpush1.bf16.msra.mxu1 %v733_v10  ;;  %v428_v10 = vld [vmem:[%s1093_s5 + $0x8] sm:$0xff] }
 0x105   :  { %736 = vmatprep.subr.bf16.mxu1 %v735_v11  ;;  %v768_v11 = vpack.c.bf16 %v428_v10, %v427_v9 }
 0x108   :  { %738 = vmatpush1.bf16.msra.mxu1 %v737_v14 }
 0x109   :  { %740 = vmatprep.subr.bf16.mxu1 %v739_v17 }
 0x10c   :  { %742 = vmatpush1.bf16.msra.mxu1 %v741_v20 }
 0x10d   :  { %767 = vmatprep.subr.bf16.mxu1 %v777_v0 }
 0x1ce   :  { %v207_v28 = vpop.f32.mrb[0].mxu1 }
 0x1cf   :  { %v208_v29 = vadd.f32 %v207_v28, %v30_v27  ;;  %v635_v30 = vpop.f32.mrb[1].mxu1 }
 0x1d1   :  { %v211_v31 = vmax.f32 %v208_v29, 0.0 }
 0x1d3   :  { %516 = vmatmul.mubr.msk.f32.vlgmr.msra.gmra.mrb[2].mxu1 %vm243_vm2, %v211_v31 }
 0x1d4   :  { %675 = vmatprep.mubr.msk.f32.mxu1 %vm778_vm0, %v779_v4  ;;  %v347_v4 = vld [vmem:[%s1091_s4 + $0x38] sm:$0xff]  ;;  %769 = vmatpush3.bf16.msra.mxu1 %v768_v11 }
 0x1d5   :  { %v753_v36 = vpack.c.bf16 %v347_v4, %v346_v35 }
 0x1d7   :  { %754 = vmatpush3.bf16.msra.mxu0 %v753_v36 }
 0x1d8   :  { %755 = vmatprep.subr.bf16.mxu0 %v777_v0 }
 0x1db   :  { %757 = vmatpush3.bf16.msra.mxu0 %v756_v39 }
 0x1dc   :  { %758 = vmatprep.subr.bf16.mxu0 %v777_v0 }
 0x1df   :  { %760 = vmatpush3.bf16.msra.mxu0 %v759_v42 }
 0x1e0   :  { %761 = vmatprep.subr.bf16.mxu0 %v777_v0 }
 0x1e3   :  { %763 = vmatpush3.bf16.msra.mxu0 %v762_v45 }
 0x1e4   :  { %764 = vmatprep.subr.bf16.mxu0 %v777_v0  ;;  %v318_v0 = vld [vmem:[%s1092_s7] sm:$0x3] }
 0x1e7   :  { %766 = vmatpush3.bf16.msra.mxu0 %v765_v48 }
 0x2a6   :  { %v313_v54 = vpop.f32.mrb[2].mxu1 }
 0x2a7   :  { %v315_v55 = vpop.f32.mrb[3].mxu1  ;;  %v314_v62 = vadd.f32 %v313_v54, %v236_v60 }
 0x2a8   :  { %v316_v56 = vadd.f32 %v315_v55, %v240_v53 }
 0x2aa   :  { %v319_v57 = vmul.f32 0.5, %v316_v56 }
 0x2ac   :  { %v320_v58 = vmul.f32 1.442695, %v319_v57 }
 0x2ae   :  { %773 = vpow2.f32 %v320_v58 }
 0x2b8   :  { %v774_v61 = vpop.eup %773 }
 0x2b9   :  { %v322_v63 = vmul.f32 %v774_v61, %v318_v0 }
 0x2bb   :  { %v323_v2 = vadd.f32 %v322_v63, %v314_v62 }
 0x2bd   :  { %669 = vmatmul.mubr.f32.vlgmr.msra.gmra.mrb[2].mxu0 %v323_v2  ;;  %v327_v3 = vmul.f32 %v323_v2, %v323_v2  ;;  %v334_v7 = vsel %vm333_vm4, %v323_v2, 0.0 }
 0x2be   :  { %v335_v8 = vsel %vm329_vm5, %v334_v7, 0.0 }
 0x2bf   :  { %v328_v5 = vsel %vm326_vm3, %v327_v3, 0.0 }
 0x2c0   :  { %v330_v6 = vsel %vm329_vm5, %v328_v5, 0.0 }
 0x2c1   :  { %331 = vadd.xlane.f32.xlu0 %v330_v6 }
 0x2c5   :  { %336 = vadd.xlane.f32.xlu0 %v335_v8 }
 0x34e   :  { %v332_v17 = vpop.xlane.xlu0 %331 }
 0x34f   :  { %775 = vrsqrt.f32 %v332_v17 }
 0x352   :  { %v337_v19 = vpop.xlane.xlu0 %336 }
 0x359   :  { %v776_v18 = vpop.eup %775 }
 0x35a   :  { %v339_v20 = vmul.f32 %v776_v18, %v337_v19 }
 0x35c   :  { %v506_v23 = vrot.slane %v339_v20, %v235_v59 }
 0x390   :  { %v422_v13 = vpop.f32.mrb[2].mxu0 }
 0x391   :  { %v423_v14 = vadd.f32 %v422_v13, %v33_v12  ;;  %v670_v15 = vpop.f32.mrb[3].mxu0 }
 0x393   :  { %v426_v16 = vmax.f32 %v423_v14, 0.0 }
 0x395   :  { %676 = vmatmul.mubr.msk.f32.vlgmr.msra.gmra.mrb[4].mxu1 %vm429_vm6, %v426_v16 }
 0x468   :  { %v499_v22 = vpop.f32.mrb[4].mxu1 }
 0x469   :  { %v500_v24 = vadd.f32 %v499_v22, %v34_v21  ;;  %v677_v25 = vpop.f32.mrb[5].mxu1 }
 0x46b   :  { %v507_v26 = vmul.f32 %v506_v23, %v500_v24 }
 0x46d   :  { %v508_v27 = vadd.f32 %v507_v26, %v314_v62 }
 0x46f   :  { %509 = vst [vmem:[%s1094_s8] sm:$0x3] %v508_v27 }

</bundles_post_ra>
